<compile_context>
chip_gen: v7x
topology: tpu7x:2x2x1
jax: 0.10.0
libtpu: 0.0.40
codegen_flags: <defaults>
</compile_context>

<pallas_src>
import jax
import jax.numpy as jnp
from jax.experimental import pallas as pl
from jax.experimental.pallas import tpu as pltpu

LANE = 128          # vreg lane width
SUB = 8             # vreg sublane count (f32)

# Per-activation-block byte target, counted in f32 terms (the kernel upcasts
# internally).  ~2 MiB/block => ~6 MiB of x+h+out DMA per grid step (past the
# per-step-overhead regime), while 2 pipeline buffers x 3 arrays x 2 MiB plus
# the in-kernel f32 working set stays well inside v7x's 64 MiB VMEM.
_TARGET_BLOCK_BYTES = 2 * 1024 * 1024
# Explicit scoped-VMEM limit: v5e default is 16 MiB, v6e/v7x 32 MiB; 48 MiB is
# safe on every generation (v7x physical VMEM = 64 MiB, v5e/v6e = 128 MiB).
_VMEM_LIMIT_BYTES = 48 * 1024 * 1024
# Below this channel count the MXU is <1% utilized and only adds latency; the
# channel mix is done with unrolled VPU scalar*slab FMAs instead.
_SMALL_C_MAX = 8


# ---------------------------------------------------------------------------
# Kernels
# ---------------------------------------------------------------------------
def _gru_fma_kernel(wx_ref, wh_ref, b_ref, x_ref, h_ref, o_ref):
    """Small-C path: channel mix as unrolled VPU broadcast-FMAs.

    wx_ref, wh_ref : SMEM (2C*C,) f32  fused [c-gate ; u-gate] weights (row-major)
    b_ref          : SMEM (2C,)   f32  fused biases (bcx+bch ; bux+buh)
    x_ref, h_ref   : VMEM (Bt, C, tr, 128) activation blocks (pixels on the
                     sublane x lane tile, channel/batch as outer dims)
    o_ref          : VMEM (Bt, C, tr, 128)
    """
    C = x_ref.shape[1]
    xs = [x_ref[:, c, :, :].astype(jnp.float32) for c in range(C)]  # (Bt, tr, 128)
    hs = [h_ref[:, c, :, :].astype(jnp.float32) for c in range(C)]
    for o in range(C):
        acc_c = xs[0] * wx_ref[o * C]
        acc_u = xs[0] * wx_ref[(C + o) * C]
        for c in range(1, C):
            acc_c = acc_c + xs[c] * wx_ref[o * C + c]
            acc_u = acc_u + xs[c] * wx_ref[(C + o) * C + c]
        for c in range(C):
            acc_c = acc_c + hs[c] * wh_ref[o * C + c]
            acc_u = acc_u + hs[c] * wh_ref[(C + o) * C + c]
        cg = jnp.tanh(acc_c + b_ref[o])
        ug = jax.nn.sigmoid(acc_u + b_ref[C + o])
        ho = hs[o]
        # u*c + (1-u)*h  ==  h + u*(c - h)
        o_ref[:, o, :, :] = (ho + ug * (cg - ho)).astype(o_ref.dtype)


def _gru_mxu_kernel(x_ref, h_ref, wx_ref, wh_ref, b_ref, o_ref):
    """General path: fused (2C,C) x (C,tn) MXU matmuls (two instead of four)."""
    hidden = b_ref.shape[0] // 2
    x = x_ref[0].astype(jnp.float32)        # (C, tn)
    h = h_ref[0].astype(jnp.float32)
    g = (jnp.dot(wx_ref[...], x, preferred_element_type=jnp.float32)
         + jnp.dot(wh_ref[...], h, preferred_element_type=jnp.float32)
         + b_ref[...])                      # (2C, tn)
    c = jnp.tanh(g[:hidden, :])
    u = jax.nn.sigmoid(g[hidden:, :])
    o_ref[0] = (h + u * (c - h)).astype(o_ref.dtype)


# ---------------------------------------------------------------------------
# Sizing helpers
# ---------------------------------------------------------------------------
def _largest_divisor_le(n, cap):
    cap = int(max(1, min(n, cap)))
    for d in range(cap, 0, -1):
        if n % d == 0:
            return d
    return 1


def _cost_estimate(batch, chans, n_pix, itemsize):
    flops = 8 * batch * n_pix * chans * chans + 10 * batch * n_pix * chans
    transcendentals = 2 * batch * n_pix * chans
    bytes_accessed = (itemsize * 3 * batch * chans * n_pix
                      + 4 * (2 * (2 * chans) * chans + 2 * chans))
    return pl.CostEstimate(flops=flops, transcendentals=transcendentals,
                           bytes_accessed=bytes_accessed)


# ---------------------------------------------------------------------------
# Forward paths
# ---------------------------------------------------------------------------
def _forward_small_c(x4, h4, wx, wh, b):
    """x4/h4: (B, C, R, 128). VPU-FMA kernel, weights via SMEM scalar prefetch."""
    B, C, R, _ = x4.shape
    itemsize_budget = 4                      # kernel upcasts to f32 internally
    row_bytes = C * LANE * itemsize_budget   # one (C, 1, 128) pixel row
    tr_cap = max(SUB, (_TARGET_BLOCK_BYTES // row_bytes) // SUB * SUB)
    if R <= tr_cap:
        tr = R                                           # full dim (no overhang)
        bt_cap = max(1, _TARGET_BLOCK_BYTES // (row_bytes * R))
        Bt = _largest_divisor_le(B, bt_cap)              # exact batch tiling
    else:
        tr = tr_cap                                      # multiple of 8
        Bt = 1
    nb, nr = pl.cdiv(B, Bt), pl.cdiv(R, tr)
    # v7x megacore: keep >= 2 blocks on a parallel axis when possible.
    if nb * nr == 1:
        if B > 1:
            Bt = _largest_divisor_le(B, (B + 1) // 2)
            nb = pl.cdiv(B, Bt)
        elif R >= 2 * SUB:
            tr = max(SUB, ((tr // 2) // SUB) * SUB)
            nr = pl.cdiv(R, tr)

    act = pl.BlockSpec((Bt, C, tr, LANE), lambda bi, ri, *_: (bi, 0, ri, 0))
    itemsize = jnp.dtype(x4.dtype).itemsize

    return pl.pallas_call(
        _gru_fma_kernel,
        out_shape=jax.ShapeDtypeStruct(x4.shape, x4.dtype),
        grid_spec=pltpu.PrefetchScalarGridSpec(
            num_scalar_prefetch=3,           # wx, wh, b land in SMEM (scalars)
            grid=(nb, nr),
            in_specs=[act, act],
            out_specs=act,
        ),
        compiler_params=pltpu.CompilerParams(
            dimension_semantics=("parallel", "parallel"),
            vmem_limit_bytes=_VMEM_LIMIT_BYTES),
        cost_estimate=_cost_estimate(B, C, R * LANE, itemsize),
    )(wx.reshape(-1), wh.reshape(-1), b, x4, h4)


def _forward_matmul(x3, h3, wx, wh, b):
    """x3/h3: (B, C, N). MXU kernel; partial trailing lane block handled by Pallas."""
    B, C, N = x3.shape
    cap = max(LANE, (_TARGET_BLOCK_BYTES // (C * 4)) // LANE * LANE)
    tn = N if N <= cap else cap              # full dim, or multiple of 128
    nt = pl.cdiv(N, tn)
    # v7x megacore: avoid a 1x1 grid when the lane axis can be split.
    if B * nt == 1 and tn >= 2 * LANE:
        tn = max(LANE, ((tn // 2) // LANE) * LANE)
        nt = pl.cdiv(N, tn)

    act = pl.BlockSpec((1, C, tn), lambda bi, ni: (bi, 0, ni))
    w_spec = pl.BlockSpec((2 * C, C), lambda bi, ni: (0, 0))
    b_spec = pl.BlockSpec((2 * C, 1), lambda bi, ni: (0, 0))
    itemsize = jnp.dtype(x3.dtype).itemsize

    return pl.pallas_call(
        _gru_mxu_kernel,
        out_shape=jax.ShapeDtypeStruct((B, C, N), x3.dtype),
        grid_spec=pltpu.PrefetchScalarGridSpec(
            num_scalar_prefetch=0,
            grid=(B, nt),
            in_specs=[act, act, w_spec, w_spec, b_spec],
            out_specs=act,
        ),
        compiler_params=pltpu.CompilerParams(
            dimension_semantics=("parallel", "parallel"),
            vmem_limit_bytes=_VMEM_LIMIT_BYTES),
        cost_estimate=_cost_estimate(B, C, N, itemsize),
    )(x3, h3, wx, wh, b[:, None])


@jax.jit
def my_gru_forward(x, h, params):
    """ConvGRU cell (all 1x1 convs).

    x, h: (B, C, H, W) NCHW, f32 or bf16 (bf16 halves HBM traffic; compute is
    f32 in-kernel either way).  Returns h_next with the same shape/dtype.
    """
    wx, wh, b = params
    B, C, H, W = x.shape
    assert h.shape == x.shape
    # h_next blends h with the gates -> requires input_size == hidden_size.
    assert wx.shape == (2 * C, C) and wh.shape == (2 * C, C) and b.shape == (2 * C,)

    N = H * W
    if C <= _SMALL_C_MAX and N % LANE == 0:
        out = _forward_small_c(x.reshape(B, C, N // LANE, LANE),
                               h.reshape(B, C, N // LANE, LANE),
                               wx, wh, b)
    else:
        out = _forward_matmul(x.reshape(B, C, N), h.reshape(B, C, N), wx, wh, b)
    return out.reshape(B, C, H, W)


# ---------------------------------------------------------------------------
# Parameter init (matches Conv2d(input, hidden, 1) shapes, pre-fused) & reference
# ---------------------------------------------------------------------------
def init_params(key, input_size, hidden_size):
    """Fused params: wx=[Wcx;Wux] (2H,C), wh=[Wch;Wuh] (2H,C), b=(bcx+bch;bux+buh) (2H,)."""
    assert input_size == hidden_size, "MyGRU forward blends h into the output"
    ks = jax.random.split(key, 8)
    bound = 1.0 / jnp.sqrt(jnp.float32(input_size))  # 1x1 conv: fan_in = in_channels

    def w(k):
        return jax.random.uniform(k, (hidden_size, input_size),
                                  jnp.float32, -bound, bound)

    def bvec(k):
        return jax.random.uniform(k, (hidden_size,), jnp.float32, -bound, bound)

    wcx, wch, wux, wuh = w(ks[0]), w(ks[1]), w(ks[2]), w(ks[3])
    bcx, bch, bux, buh = bvec(ks[4]), bvec(ks[5]), bvec(ks[6]), bvec(ks[7])

    wx = jnp.concatenate([wcx, wux], axis=0)              # (2H, C)
    wh = jnp.concatenate([wch, wuh], axis=0)              # (2H, C)
    b = jnp.concatenate([bcx + bch, bux + buh])           # (2H,)
    return (wx, wh, b)


def my_gru_reference(x, h, params):
    """Pure-JAX (f32) reference of the PyTorch forward."""
    wx, wh, b = params
    B, C, H, W = x.shape
    x3 = x.reshape(B, C, -1).astype(jnp.float32)
    h3 = h.reshape(B, C, -1).astype(jnp.float32)
    g = (jnp.einsum('oc,bcn->bon', wx, x3)
         + jnp.einsum('oc,bcn->bon', wh, h3)
         + b[None, :, None])
    c = jnp.tanh(g[:, :C])
    u = jax.nn.sigmoid(g[:, C:])
    out = u * c + (1.0 - u) * h3
    return out.reshape(B, C, H, W)


# ---------------------------------------------------------------------------
# Demo / self-test
# ---------------------------------------------------------------------------
if __name__ == "__main__":
    key = jax.random.PRNGKey(0)
    kx, kh, kp, k2 = jax.random.split(key, 4)

    # Small-C (VPU-FMA) path in f32 -- matches the PyTorch module exactly.
    B, C, H, W = 2, 4, 16, 16
    x = jax.random.normal(kx, (B, C, H, W), jnp.float32)
    h = jax.random.normal(kh, (B, C, H, W), jnp.float32)
    params = init_params(kp, C, C)

    h_next = jax.block_until_ready(my_gru_forward(x, h, params))
    ref = my_gru_reference(x, h, params)
    assert h_next.shape == (B, C, H, W) and h_next.dtype == x.dtype
    assert jnp.allclose(h_next, ref, atol=1e-5, rtol=1e-5)

    # bf16 I/O (half the HBM traffic); in-kernel compute stays f32.
    xb, hb = x.astype(jnp.bfloat16), h.astype(jnp.bfloat16)
    h_bf16 = jax.block_until_ready(my_gru_forward(xb, hb, params))
    ref_bf16 = my_gru_reference(xb, hb, params)
    assert h_bf16.dtype == jnp.bfloat16
    assert jnp.allclose(h_bf16.astype(jnp.float32), ref_bf16, atol=5e-2, rtol=5e-2)

    # Larger-C (MXU) path sanity check.
    C2 = 32
    x2 = jax.random.normal(k2, (1, C2, 16, 16), jnp.float32)
    h2 = jax.random.normal(jax.random.fold_in(k2, 1), (1, C2, 16, 16), jnp.float32)
    p2 = init_params(jax.random.fold_in(k2, 2), C2, C2)
    out2 = jax.block_until_ready(my_gru_forward(x2, h2, p2))
    assert jnp.allclose(out2, my_gru_reference(x2, h2, p2), atol=1e-3, rtol=1e-3)

    print("KERNEL_OK")
</pallas_src>

<mosaic_0001>
module attributes {stable_mosaic.version = 11 : i64} {
  func.func @_gru_fma_kernel(%arg0: i32, %arg1: i32, %arg2: memref<32xf32, #tpu.memory_space<smem>>, %arg3: memref<32xf32, #tpu.memory_space<smem>>, %arg4: memref<8xf32, #tpu.memory_space<smem>>, %arg5: memref<1x4x2x128xf32, #tpu.memory_space<vmem>>, %arg6: memref<1x4x2x128xf32, #tpu.memory_space<vmem>>, %arg7: memref<1x4x2x128xf32, #tpu.memory_space<vmem>>) attributes {dimension_semantics = [#tpu.dimension_semantics<parallel>, #tpu.dimension_semantics<parallel>], iteration_bounds = array<i64: 2, 1>, scalar_prefetch = 3 : i64, scratch_operands = 0 : i64, tpu.core_type = #tpu.core_type<tc>, window_params = [{transform_indices = @transform_0, window_bounds = array<i64: 1, 4, 2, 128>}, {transform_indices = @transform_1, window_bounds = array<i64: 1, 4, 2, 128>}, {transform_indices = @transform_2, window_bounds = array<i64: 1, 4, 2, 128>}]} {
    %c0 = arith.constant 0 : index
    %c0_0 = arith.constant 0 : index
    %c0_1 = arith.constant 0 : index
    %c0_2 = arith.constant 0 : index
    %0 = vector.load %arg5[%c0, %c0_0, %c0_1, %c0_2] : memref<1x4x2x128xf32, #tpu.memory_space<vmem>>, vector<1x1x2x128xf32>
    %1 = vector.shape_cast %0 : vector<1x1x2x128xf32> to vector<1x2x128xf32>
    %c0_3 = arith.constant 0 : index
    %c1 = arith.constant 1 : index
    %c0_4 = arith.constant 0 : index
    %c0_5 = arith.constant 0 : index
    %2 = vector.load %arg5[%c0_3, %c1, %c0_4, %c0_5] : memref<1x4x2x128xf32, #tpu.memory_space<vmem>>, vector<1x1x2x128xf32>
    %3 = vector.shape_cast %2 : vector<1x1x2x128xf32> to vector<1x2x128xf32>
    %c0_6 = arith.constant 0 : index
    %c2 = arith.constant 2 : index
    %c0_7 = arith.constant 0 : index
    %c0_8 = arith.constant 0 : index
    %4 = vector.load %arg5[%c0_6, %c2, %c0_7, %c0_8] : memref<1x4x2x128xf32, #tpu.memory_space<vmem>>, vector<1x1x2x128xf32>
    %5 = vector.shape_cast %4 : vector<1x1x2x128xf32> to vector<1x2x128xf32>
    %c0_9 = arith.constant 0 : index
    %c3 = arith.constant 3 : index
    %c0_10 = arith.constant 0 : index
    %c0_11 = arith.constant 0 : index
    %6 = vector.load %arg5[%c0_9, %c3, %c0_10, %c0_11] : memref<1x4x2x128xf32, #tpu.memory_space<vmem>>, vector<1x1x2x128xf32>
    %7 = vector.shape_cast %6 : vector<1x1x2x128xf32> to vector<1x2x128xf32>
    %c0_12 = arith.constant 0 : index
    %c0_13 = arith.constant 0 : index
    %c0_14 = arith.constant 0 : index
    %c0_15 = arith.constant 0 : index
    %8 = vector.load %arg6[%c0_12, %c0_13, %c0_14, %c0_15] : memref<1x4x2x128xf32, #tpu.memory_space<vmem>>, vector<1x1x2x128xf32>
    %9 = vector.shape_cast %8 : vector<1x1x2x128xf32> to vector<1x2x128xf32>
    %c0_16 = arith.constant 0 : index
    %c1_17 = arith.constant 1 : index
    %c0_18 = arith.constant 0 : index
    %c0_19 = arith.constant 0 : index
    %10 = vector.load %arg6[%c0_16, %c1_17, %c0_18, %c0_19] : memref<1x4x2x128xf32, #tpu.memory_space<vmem>>, vector<1x1x2x128xf32>
    %11 = vector.shape_cast %10 : vector<1x1x2x128xf32> to vector<1x2x128xf32>
    %c0_20 = arith.constant 0 : index
    %c2_21 = arith.constant 2 : index
    %c0_22 = arith.constant 0 : index
    %c0_23 = arith.constant 0 : index
    %12 = vector.load %arg6[%c0_20, %c2_21, %c0_22, %c0_23] : memref<1x4x2x128xf32, #tpu.memory_space<vmem>>, vector<1x1x2x128xf32>
    %13 = vector.shape_cast %12 : vector<1x1x2x128xf32> to vector<1x2x128xf32>
    %c0_24 = arith.constant 0 : index
    %c3_25 = arith.constant 3 : index
    %c0_26 = arith.constant 0 : index
    %c0_27 = arith.constant 0 : index
    %14 = vector.load %arg6[%c0_24, %c3_25, %c0_26, %c0_27] : memref<1x4x2x128xf32, #tpu.memory_space<vmem>>, vector<1x1x2x128xf32>
    %15 = vector.shape_cast %14 : vector<1x1x2x128xf32> to vector<1x2x128xf32>
    %c0_28 = arith.constant 0 : index
    %16 = memref.load %arg2[%c0_28] : memref<32xf32, #tpu.memory_space<smem>>
    %17 = vector.broadcast %16 : f32 to vector<1x2x128xf32>
    %18 = arith.mulf %1, %17 : vector<1x2x128xf32>
    %c16 = arith.constant 16 : index
    %19 = memref.load %arg2[%c16] : memref<32xf32, #tpu.memory_space<smem>>
    %20 = vector.broadcast %19 : f32 to vector<1x2x128xf32>
    %21 = arith.mulf %1, %20 : vector<1x2x128xf32>
    %c1_29 = arith.constant 1 : index
    %22 = memref.load %arg2[%c1_29] : memref<32xf32, #tpu.memory_space<smem>>
    %23 = vector.broadcast %22 : f32 to vector<1x2x128xf32>
    %24 = arith.mulf %3, %23 : vector<1x2x128xf32>
    %25 = arith.addf %18, %24 : vector<1x2x128xf32>
    %c17 = arith.constant 17 : index
    %26 = memref.load %arg2[%c17] : memref<32xf32, #tpu.memory_space<smem>>
    %27 = vector.broadcast %26 : f32 to vector<1x2x128xf32>
    %28 = arith.mulf %3, %27 : vector<1x2x128xf32>
    %29 = arith.addf %21, %28 : vector<1x2x128xf32>
    %c2_30 = arith.constant 2 : index
    %30 = memref.load %arg2[%c2_30] : memref<32xf32, #tpu.memory_space<smem>>
    %31 = vector.broadcast %30 : f32 to vector<1x2x128xf32>
    %32 = arith.mulf %5, %31 : vector<1x2x128xf32>
    %33 = arith.addf %25, %32 : vector<1x2x128xf32>
    %c18 = arith.constant 18 : index
    %34 = memref.load %arg2[%c18] : memref<32xf32, #tpu.memory_space<smem>>
    %35 = vector.broadcast %34 : f32 to vector<1x2x128xf32>
    %36 = arith.mulf %5, %35 : vector<1x2x128xf32>
    %37 = arith.addf %29, %36 : vector<1x2x128xf32>
    %c3_31 = arith.constant 3 : index
    %38 = memref.load %arg2[%c3_31] : memref<32xf32, #tpu.memory_space<smem>>
    %39 = vector.broadcast %38 : f32 to vector<1x2x128xf32>
    %40 = arith.mulf %7, %39 : vector<1x2x128xf32>
    %41 = arith.addf %33, %40 : vector<1x2x128xf32>
    %c19 = arith.constant 19 : index
    %42 = memref.load %arg2[%c19] : memref<32xf32, #tpu.memory_space<smem>>
    %43 = vector.broadcast %42 : f32 to vector<1x2x128xf32>
    %44 = arith.mulf %7, %43 : vector<1x2x128xf32>
    %45 = arith.addf %37, %44 : vector<1x2x128xf32>
    %c0_32 = arith.constant 0 : index
    %46 = memref.load %arg3[%c0_32] : memref<32xf32, #tpu.memory_space<smem>>
    %47 = vector.broadcast %46 : f32 to vector<1x2x128xf32>
    %48 = arith.mulf %9, %47 : vector<1x2x128xf32>
    %49 = arith.addf %41, %48 : vector<1x2x128xf32>
    %c16_33 = arith.constant 16 : index
    %50 = memref.load %arg3[%c16_33] : memref<32xf32, #tpu.memory_space<smem>>
    %51 = vector.broadcast %50 : f32 to vector<1x2x128xf32>
    %52 = arith.mulf %9, %51 : vector<1x2x128xf32>
    %53 = arith.addf %45, %52 : vector<1x2x128xf32>
    %c1_34 = arith.constant 1 : index
    %54 = memref.load %arg3[%c1_34] : memref<32xf32, #tpu.memory_space<smem>>
    %55 = vector.broadcast %54 : f32 to vector<1x2x128xf32>
    %56 = arith.mulf %11, %55 : vector<1x2x128xf32>
    %57 = arith.addf %49, %56 : vector<1x2x128xf32>
    %c17_35 = arith.constant 17 : index
    %58 = memref.load %arg3[%c17_35] : memref<32xf32, #tpu.memory_space<smem>>
    %59 = vector.broadcast %58 : f32 to vector<1x2x128xf32>
    %60 = arith.mulf %11, %59 : vector<1x2x128xf32>
    %61 = arith.addf %53, %60 : vector<1x2x128xf32>
    %c2_36 = arith.constant 2 : index
    %62 = memref.load %arg3[%c2_36] : memref<32xf32, #tpu.memory_space<smem>>
    %63 = vector.broadcast %62 : f32 to vector<1x2x128xf32>
    %64 = arith.mulf %13, %63 : vector<1x2x128xf32>
    %65 = arith.addf %57, %64 : vector<1x2x128xf32>
    %c18_37 = arith.constant 18 : index
    %66 = memref.load %arg3[%c18_37] : memref<32xf32, #tpu.memory_space<smem>>
    %67 = vector.broadcast %66 : f32 to vector<1x2x128xf32>
    %68 = arith.mulf %13, %67 : vector<1x2x128xf32>
    %69 = arith.addf %61, %68 : vector<1x2x128xf32>
    %c3_38 = arith.constant 3 : index
    %70 = memref.load %arg3[%c3_38] : memref<32xf32, #tpu.memory_space<smem>>
    %71 = vector.broadcast %70 : f32 to vector<1x2x128xf32>
    %72 = arith.mulf %15, %71 : vector<1x2x128xf32>
    %73 = arith.addf %65, %72 : vector<1x2x128xf32>
    %c19_39 = arith.constant 19 : index
    %74 = memref.load %arg3[%c19_39] : memref<32xf32, #tpu.memory_space<smem>>
    %75 = vector.broadcast %74 : f32 to vector<1x2x128xf32>
    %76 = arith.mulf %15, %75 : vector<1x2x128xf32>
    %77 = arith.addf %69, %76 : vector<1x2x128xf32>
    %c0_40 = arith.constant 0 : index
    %78 = memref.load %arg4[%c0_40] : memref<8xf32, #tpu.memory_space<smem>>
    %79 = vector.broadcast %78 : f32 to vector<1x2x128xf32>
    %80 = arith.addf %73, %79 : vector<1x2x128xf32>
    %81 = math.tanh %80 : vector<1x2x128xf32>
    %c4 = arith.constant 4 : index
    %82 = memref.load %arg4[%c4] : memref<8xf32, #tpu.memory_space<smem>>
    %83 = vector.broadcast %82 : f32 to vector<1x2x128xf32>
    %84 = arith.addf %77, %83 : vector<1x2x128xf32>
    %85 = arith.negf %84 : vector<1x2x128xf32>
    %86 = math.exp %85 : vector<1x2x128xf32>
    %cst = arith.constant 1.000000e+00 : f32
    %87 = vector.broadcast %cst : f32 to vector<1x2x128xf32>
    %88 = arith.addf %87, %86 : vector<1x2x128xf32>
    %89 = arith.divf %87, %88 : vector<1x2x128xf32>
    %90 = arith.subf %81, %9 : vector<1x2x128xf32>
    %91 = arith.mulf %89, %90 : vector<1x2x128xf32>
    %92 = arith.addf %9, %91 : vector<1x2x128xf32>
    %c0_41 = arith.constant 0 : index
    %c0_42 = arith.constant 0 : index
    %c0_43 = arith.constant 0 : index
    %c0_44 = arith.constant 0 : index
    %93 = vector.load %arg7[%c0_41, %c0_42, %c0_43, %c0_44] : memref<1x4x2x128xf32, #tpu.memory_space<vmem>>, vector<1x1x2x128xf32>
    %94 = vector.shape_cast %93 : vector<1x1x2x128xf32> to vector<1x2x128xf32>
    %95 = vector.shape_cast %92 : vector<1x2x128xf32> to vector<1x1x2x128xf32>
    tpu.vector_store %arg7[%c0_41, %c0_42, %c0_43, %c0_44], %95 {strides = array<i32>} : memref<1x4x2x128xf32, #tpu.memory_space<vmem>>, vector<1x1x2x128xf32>,
    %c4_45 = arith.constant 4 : index
    %96 = memref.load %arg2[%c4_45] : memref<32xf32, #tpu.memory_space<smem>>
    %97 = vector.broadcast %96 : f32 to vector<1x2x128xf32>
    %98 = arith.mulf %1, %97 : vector<1x2x128xf32>
    %c20 = arith.constant 20 : index
    %99 = memref.load %arg2[%c20] : memref<32xf32, #tpu.memory_space<smem>>
    %100 = vector.broadcast %99 : f32 to vector<1x2x128xf32>
    %101 = arith.mulf %1, %100 : vector<1x2x128xf32>
    %c5 = arith.constant 5 : index
    %102 = memref.load %arg2[%c5] : memref<32xf32, #tpu.memory_space<smem>>
    %103 = vector.broadcast %102 : f32 to vector<1x2x128xf32>
    %104 = arith.mulf %3, %103 : vector<1x2x128xf32>
    %105 = arith.addf %98, %104 : vector<1x2x128xf32>
    %c21 = arith.constant 21 : index
    %106 = memref.load %arg2[%c21] : memref<32xf32, #tpu.memory_space<smem>>
    %107 = vector.broadcast %106 : f32 to vector<1x2x128xf32>
    %108 = arith.mulf %3, %107 : vector<1x2x128xf32>
    %109 = arith.addf %101, %108 : vector<1x2x128xf32>
    %c6 = arith.constant 6 : index
    %110 = memref.load %arg2[%c6] : memref<32xf32, #tpu.memory_space<smem>>
    %111 = vector.broadcast %110 : f32 to vector<1x2x128xf32>
    %112 = arith.mulf %5, %111 : vector<1x2x128xf32>
    %113 = arith.addf %105, %112 : vector<1x2x128xf32>
    %c22 = arith.constant 22 : index
    %114 = memref.load %arg2[%c22] : memref<32xf32, #tpu.memory_space<smem>>
    %115 = vector.broadcast %114 : f32 to vector<1x2x128xf32>
    %116 = arith.mulf %5, %115 : vector<1x2x128xf32>
    %117 = arith.addf %109, %116 : vector<1x2x128xf32>
    %c7 = arith.constant 7 : index
    %118 = memref.load %arg2[%c7] : memref<32xf32, #tpu.memory_space<smem>>
    %119 = vector.broadcast %118 : f32 to vector<1x2x128xf32>
    %120 = arith.mulf %7, %119 : vector<1x2x128xf32>
    %121 = arith.addf %113, %120 : vector<1x2x128xf32>
    %c23 = arith.constant 23 : index
    %122 = memref.load %arg2[%c23] : memref<32xf32, #tpu.memory_space<smem>>
    %123 = vector.broadcast %122 : f32 to vector<1x2x128xf32>
    %124 = arith.mulf %7, %123 : vector<1x2x128xf32>
    %125 = arith.addf %117, %124 : vector<1x2x128xf32>
    %c4_46 = arith.constant 4 : index
    %126 = memref.load %arg3[%c4_46] : memref<32xf32, #tpu.memory_space<smem>>
    %127 = vector.broadcast %126 : f32 to vector<1x2x128xf32>
    %128 = arith.mulf %9, %127 : vector<1x2x128xf32>
    %129 = arith.addf %121, %128 : vector<1x2x128xf32>
    %c20_47 = arith.constant 20 : index
    %130 = memref.load %arg3[%c20_47] : memref<32xf32, #tpu.memory_space<smem>>
    %131 = vector.broadcast %130 : f32 to vector<1x2x128xf32>
    %132 = arith.mulf %9, %131 : vector<1x2x128xf32>
    %133 = arith.addf %125, %132 : vector<1x2x128xf32>
    %c5_48 = arith.constant 5 : index
    %134 = memref.load %arg3[%c5_48] : memref<32xf32, #tpu.memory_space<smem>>
    %135 = vector.broadcast %134 : f32 to vector<1x2x128xf32>
    %136 = arith.mulf %11, %135 : vector<1x2x128xf32>
    %137 = arith.addf %129, %136 : vector<1x2x128xf32>
    %c21_49 = arith.constant 21 : index
    %138 = memref.load %arg3[%c21_49] : memref<32xf32, #tpu.memory_space<smem>>
    %139 = vector.broadcast %138 : f32 to vector<1x2x128xf32>
    %140 = arith.mulf %11, %139 : vector<1x2x128xf32>
    %141 = arith.addf %133, %140 : vector<1x2x128xf32>
    %c6_50 = arith.constant 6 : index
    %142 = memref.load %arg3[%c6_50] : memref<32xf32, #tpu.memory_space<smem>>
    %143 = vector.broadcast %142 : f32 to vector<1x2x128xf32>
    %144 = arith.mulf %13, %143 : vector<1x2x128xf32>
    %145 = arith.addf %137, %144 : vector<1x2x128xf32>
    %c22_51 = arith.constant 22 : index
    %146 = memref.load %arg3[%c22_51] : memref<32xf32, #tpu.memory_space<smem>>
    %147 = vector.broadcast %146 : f32 to vector<1x2x128xf32>
    %148 = arith.mulf %13, %147 : vector<1x2x128xf32>
    %149 = arith.addf %141, %148 : vector<1x2x128xf32>
    %c7_52 = arith.constant 7 : index
    %150 = memref.load %arg3[%c7_52] : memref<32xf32, #tpu.memory_space<smem>>
    %151 = vector.broadcast %150 : f32 to vector<1x2x128xf32>
    %152 = arith.mulf %15, %151 : vector<1x2x128xf32>
    %153 = arith.addf %145, %152 : vector<1x2x128xf32>
    %c23_53 = arith.constant 23 : index
    %154 = memref.load %arg3[%c23_53] : memref<32xf32, #tpu.memory_space<smem>>
    %155 = vector.broadcast %154 : f32 to vector<1x2x128xf32>
    %156 = arith.mulf %15, %155 : vector<1x2x128xf32>
    %157 = arith.addf %149, %156 : vector<1x2x128xf32>
    %c1_54 = arith.constant 1 : index
    %158 = memref.load %arg4[%c1_54] : memref<8xf32, #tpu.memory_space<smem>>
    %159 = vector.broadcast %158 : f32 to vector<1x2x128xf32>
    %160 = arith.addf %153, %159 : vector<1x2x128xf32>
    %161 = math.tanh %160 : vector<1x2x128xf32>
    %c5_55 = arith.constant 5 : index
    %162 = memref.load %arg4[%c5_55] : memref<8xf32, #tpu.memory_space<smem>>
    %163 = vector.broadcast %162 : f32 to vector<1x2x128xf32>
    %164 = arith.addf %157, %163 : vector<1x2x128xf32>
    %165 = arith.negf %164 : vector<1x2x128xf32>
    %166 = math.exp %165 : vector<1x2x128xf32>
    %cst_56 = arith.constant 1.000000e+00 : f32
    %167 = vector.broadcast %cst_56 : f32 to vector<1x2x128xf32>
    %168 = arith.addf %167, %166 : vector<1x2x128xf32>
    %169 = arith.divf %167, %168 : vector<1x2x128xf32>
    %170 = arith.subf %161, %11 : vector<1x2x128xf32>
    %171 = arith.mulf %169, %170 : vector<1x2x128xf32>
    %172 = arith.addf %11, %171 : vector<1x2x128xf32>
    %c0_57 = arith.constant 0 : index
    %c1_58 = arith.constant 1 : index
    %c0_59 = arith.constant 0 : index
    %c0_60 = arith.constant 0 : index
    %173 = vector.load %arg7[%c0_57, %c1_58, %c0_59, %c0_60] : memref<1x4x2x128xf32, #tpu.memory_space<vmem>>, vector<1x1x2x128xf32>
    %174 = vector.shape_cast %173 : vector<1x1x2x128xf32> to vector<1x2x128xf32>
    %175 = vector.shape_cast %172 : vector<1x2x128xf32> to vector<1x1x2x128xf32>
    tpu.vector_store %arg7[%c0_57, %c1_58, %c0_59, %c0_60], %175 {strides = array<i32>} : memref<1x4x2x128xf32, #tpu.memory_space<vmem>>, vector<1x1x2x128xf32>,
    %c8 = arith.constant 8 : index
    %176 = memref.load %arg2[%c8] : memref<32xf32, #tpu.memory_space<smem>>
    %177 = vector.broadcast %176 : f32 to vector<1x2x128xf32>
    %178 = arith.mulf %1, %177 : vector<1x2x128xf32>
    %c24 = arith.constant 24 : index
    %179 = memref.load %arg2[%c24] : memref<32xf32, #tpu.memory_space<smem>>
    %180 = vector.broadcast %179 : f32 to vector<1x2x128xf32>
    %181 = arith.mulf %1, %180 : vector<1x2x128xf32>
    %c9 = arith.constant 9 : index
    %182 = memref.load %arg2[%c9] : memref<32xf32, #tpu.memory_space<smem>>
    %183 = vector.broadcast %182 : f32 to vector<1x2x128xf32>
    %184 = arith.mulf %3, %183 : vector<1x2x128xf32>
    %185 = arith.addf %178, %184 : vector<1x2x128xf32>
    %c25 = arith.constant 25 : index
    %186 = memref.load %arg2[%c25] : memref<32xf32, #tpu.memory_space<smem>>
    %187 = vector.broadcast %186 : f32 to vector<1x2x128xf32>
    %188 = arith.mulf %3, %187 : vector<1x2x128xf32>
    %189 = arith.addf %181, %188 : vector<1x2x128xf32>
    %c10 = arith.constant 10 : index
    %190 = memref.load %arg2[%c10] : memref<32xf32, #tpu.memory_space<smem>>
    %191 = vector.broadcast %190 : f32 to vector<1x2x128xf32>
    %192 = arith.mulf %5, %191 : vector<1x2x128xf32>
    %193 = arith.addf %185, %192 : vector<1x2x128xf32>
    %c26 = arith.constant 26 : index
    %194 = memref.load %arg2[%c26] : memref<32xf32, #tpu.memory_space<smem>>
    %195 = vector.broadcast %194 : f32 to vector<1x2x128xf32>
    %196 = arith.mulf %5, %195 : vector<1x2x128xf32>
    %197 = arith.addf %189, %196 : vector<1x2x128xf32>
    %c11 = arith.constant 11 : index
    %198 = memref.load %arg2[%c11] : memref<32xf32, #tpu.memory_space<smem>>
    %199 = vector.broadcast %198 : f32 to vector<1x2x128xf32>
    %200 = arith.mulf %7, %199 : vector<1x2x128xf32>
    %201 = arith.addf %193, %200 : vector<1x2x128xf32>
    %c27 = arith.constant 27 : index
    %202 = memref.load %arg2[%c27] : memref<32xf32, #tpu.memory_space<smem>>
    %203 = vector.broadcast %202 : f32 to vector<1x2x128xf32>
    %204 = arith.mulf %7, %203 : vector<1x2x128xf32>
    %205 = arith.addf %197, %204 : vector<1x2x128xf32>
    %c8_61 = arith.constant 8 : index
    %206 = memref.load %arg3[%c8_61] : memref<32xf32, #tpu.memory_space<smem>>
    %207 = vector.broadcast %206 : f32 to vector<1x2x128xf32>
    %208 = arith.mulf %9, %207 : vector<1x2x128xf32>
    %209 = arith.addf %201, %208 : vector<1x2x128xf32>
    %c24_62 = arith.constant 24 : index
    %210 = memref.load %arg3[%c24_62] : memref<32xf32, #tpu.memory_space<smem>>
    %211 = vector.broadcast %210 : f32 to vector<1x2x128xf32>
    %212 = arith.mulf %9, %211 : vector<1x2x128xf32>
    %213 = arith.addf %205, %212 : vector<1x2x128xf32>
    %c9_63 = arith.constant 9 : index
    %214 = memref.load %arg3[%c9_63] : memref<32xf32, #tpu.memory_space<smem>>
    %215 = vector.broadcast %214 : f32 to vector<1x2x128xf32>
    %216 = arith.mulf %11, %215 : vector<1x2x128xf32>
    %217 = arith.addf %209, %216 : vector<1x2x128xf32>
    %c25_64 = arith.constant 25 : index
    %218 = memref.load %arg3[%c25_64] : memref<32xf32, #tpu.memory_space<smem>>
    %219 = vector.broadcast %218 : f32 to vector<1x2x128xf32>
    %220 = arith.mulf %11, %219 : vector<1x2x128xf32>
    %221 = arith.addf %213, %220 : vector<1x2x128xf32>
    %c10_65 = arith.constant 10 : index
    %222 = memref.load %arg3[%c10_65] : memref<32xf32, #tpu.memory_space<smem>>
    %223 = vector.broadcast %222 : f32 to vector<1x2x128xf32>
    %224 = arith.mulf %13, %223 : vector<1x2x128xf32>
    %225 = arith.addf %217, %224 : vector<1x2x128xf32>
    %c26_66 = arith.constant 26 : index
    %226 = memref.load %arg3[%c26_66] : memref<32xf32, #tpu.memory_space<smem>>
    %227 = vector.broadcast %226 : f32 to vector<1x2x128xf32>
    %228 = arith.mulf %13, %227 : vector<1x2x128xf32>
    %229 = arith.addf %221, %228 : vector<1x2x128xf32>
    %c11_67 = arith.constant 11 : index
    %230 = memref.load %arg3[%c11_67] : memref<32xf32, #tpu.memory_space<smem>>
    %231 = vector.broadcast %230 : f32 to vector<1x2x128xf32>
    %232 = arith.mulf %15, %231 : vector<1x2x128xf32>
    %233 = arith.addf %225, %232 : vector<1x2x128xf32>
    %c27_68 = arith.constant 27 : index
    %234 = memref.load %arg3[%c27_68] : memref<32xf32, #tpu.memory_space<smem>>
    %235 = vector.broadcast %234 : f32 to vector<1x2x128xf32>
    %236 = arith.mulf %15, %235 : vector<1x2x128xf32>
    %237 = arith.addf %229, %236 : vector<1x2x128xf32>
    %c2_69 = arith.constant 2 : index
    %238 = memref.load %arg4[%c2_69] : memref<8xf32, #tpu.memory_space<smem>>
    %239 = vector.broadcast %238 : f32 to vector<1x2x128xf32>
    %240 = arith.addf %233, %239 : vector<1x2x128xf32>
    %241 = math.tanh %240 : vector<1x2x128xf32>
    %c6_70 = arith.constant 6 : index
    %242 = memref.load %arg4[%c6_70] : memref<8xf32, #tpu.memory_space<smem>>
    %243 = vector.broadcast %242 : f32 to vector<1x2x128xf32>
    %244 = arith.addf %237, %243 : vector<1x2x128xf32>
    %245 = arith.negf %244 : vector<1x2x128xf32>
    %246 = math.exp %245 : vector<1x2x128xf32>
    %cst_71 = arith.constant 1.000000e+00 : f32
    %247 = vector.broadcast %cst_71 : f32 to vector<1x2x128xf32>
    %248 = arith.addf %247, %246 : vector<1x2x128xf32>
    %249 = arith.divf %247, %248 : vector<1x2x128xf32>
    %250 = arith.subf %241, %13 : vector<1x2x128xf32>
    %251 = arith.mulf %249, %250 : vector<1x2x128xf32>
    %252 = arith.addf %13, %251 : vector<1x2x128xf32>
    %c0_72 = arith.constant 0 : index
    %c2_73 = arith.constant 2 : index
    %c0_74 = arith.constant 0 : index
    %c0_75 = arith.constant 0 : index
    %253 = vector.load %arg7[%c0_72, %c2_73, %c0_74, %c0_75] : memref<1x4x2x128xf32, #tpu.memory_space<vmem>>, vector<1x1x2x128xf32>
    %254 = vector.shape_cast %253 : vector<1x1x2x128xf32> to vector<1x2x128xf32>
    %255 = vector.shape_cast %252 : vector<1x2x128xf32> to vector<1x1x2x128xf32>
    tpu.vector_store %arg7[%c0_72, %c2_73, %c0_74, %c0_75], %255 {strides = array<i32>} : memref<1x4x2x128xf32, #tpu.memory_space<vmem>>, vector<1x1x2x128xf32>,
    %c12 = arith.constant 12 : index
    %256 = memref.load %arg2[%c12] : memref<32xf32, #tpu.memory_space<smem>>
    %257 = vector.broadcast %256 : f32 to vector<1x2x128xf32>
    %258 = arith.mulf %1, %257 : vector<1x2x128xf32>
    %c28 = arith.constant 28 : index
    %259 = memref.load %arg2[%c28] : memref<32xf32, #tpu.memory_space<smem>>
    %260 = vector.broadcast %259 : f32 to vector<1x2x128xf32>
    %261 = arith.mulf %1, %260 : vector<1x2x128xf32>
    %c13 = arith.constant 13 : index
    %262 = memref.load %arg2[%c13] : memref<32xf32, #tpu.memory_space<smem>>
    %263 = vector.broadcast %262 : f32 to vector<1x2x128xf32>
    %264 = arith.mulf %3, %263 : vector<1x2x128xf32>
    %265 = arith.addf %258, %264 : vector<1x2x128xf32>
    %c29 = arith.constant 29 : index
    %266 = memref.load %arg2[%c29] : memref<32xf32, #tpu.memory_space<smem>>
    %267 = vector.broadcast %266 : f32 to vector<1x2x128xf32>
    %268 = arith.mulf %3, %267 : vector<1x2x128xf32>
    %269 = arith.addf %261, %268 : vector<1x2x128xf32>
    %c14 = arith.constant 14 : index
    %270 = memref.load %arg2[%c14] : memref<32xf32, #tpu.memory_space<smem>>
    %271 = vector.broadcast %270 : f32 to vector<1x2x128xf32>
    %272 = arith.mulf %5, %271 : vector<1x2x128xf32>
    %273 = arith.addf %265, %272 : vector<1x2x128xf32>
    %c30 = arith.constant 30 : index
    %274 = memref.load %arg2[%c30] : memref<32xf32, #tpu.memory_space<smem>>
    %275 = vector.broadcast %274 : f32 to vector<1x2x128xf32>
    %276 = arith.mulf %5, %275 : vector<1x2x128xf32>
    %277 = arith.addf %269, %276 : vector<1x2x128xf32>
    %c15 = arith.constant 15 : index
    %278 = memref.load %arg2[%c15] : memref<32xf32, #tpu.memory_space<smem>>
    %279 = vector.broadcast %278 : f32 to vector<1x2x128xf32>
    %280 = arith.mulf %7, %279 : vector<1x2x128xf32>
    %281 = arith.addf %273, %280 : vector<1x2x128xf32>
    %c31 = arith.constant 31 : index
    %282 = memref.load %arg2[%c31] : memref<32xf32, #tpu.memory_space<smem>>
    %283 = vector.broadcast %282 : f32 to vector<1x2x128xf32>
    %284 = arith.mulf %7, %283 : vector<1x2x128xf32>
    %285 = arith.addf %277, %284 : vector<1x2x128xf32>
    %c12_76 = arith.constant 12 : index
    %286 = memref.load %arg3[%c12_76] : memref<32xf32, #tpu.memory_space<smem>>
    %287 = vector.broadcast %286 : f32 to vector<1x2x128xf32>
    %288 = arith.mulf %9, %287 : vector<1x2x128xf32>
    %289 = arith.addf %281, %288 : vector<1x2x128xf32>
    %c28_77 = arith.constant 28 : index
    %290 = memref.load %arg3[%c28_77] : memref<32xf32, #tpu.memory_space<smem>>
    %291 = vector.broadcast %290 : f32 to vector<1x2x128xf32>
    %292 = arith.mulf %9, %291 : vector<1x2x128xf32>
    %293 = arith.addf %285, %292 : vector<1x2x128xf32>
    %c13_78 = arith.constant 13 : index
    %294 = memref.load %arg3[%c13_78] : memref<32xf32, #tpu.memory_space<smem>>
    %295 = vector.broadcast %294 : f32 to vector<1x2x128xf32>
    %296 = arith.mulf %11, %295 : vector<1x2x128xf32>
    %297 = arith.addf %289, %296 : vector<1x2x128xf32>
    %c29_79 = arith.constant 29 : index
    %298 = memref.load %arg3[%c29_79] : memref<32xf32, #tpu.memory_space<smem>>
    %299 = vector.broadcast %298 : f32 to vector<1x2x128xf32>
    %300 = arith.mulf %11, %299 : vector<1x2x128xf32>
    %301 = arith.addf %293, %300 : vector<1x2x128xf32>
    %c14_80 = arith.constant 14 : index
    %302 = memref.load %arg3[%c14_80] : memref<32xf32, #tpu.memory_space<smem>>
    %303 = vector.broadcast %302 : f32 to vector<1x2x128xf32>
    %304 = arith.mulf %13, %303 : vector<1x2x128xf32>
    %305 = arith.addf %297, %304 : vector<1x2x128xf32>
    %c30_81 = arith.constant 30 : index
    %306 = memref.load %arg3[%c30_81] : memref<32xf32, #tpu.memory_space<smem>>
    %307 = vector.broadcast %306 : f32 to vector<1x2x128xf32>
    %308 = arith.mulf %13, %307 : vector<1x2x128xf32>
    %309 = arith.addf %301, %308 : vector<1x2x128xf32>
    %c15_82 = arith.constant 15 : index
    %310 = memref.load %arg3[%c15_82] : memref<32xf32, #tpu.memory_space<smem>>
    %311 = vector.broadcast %310 : f32 to vector<1x2x128xf32>
    %312 = arith.mulf %15, %311 : vector<1x2x128xf32>
    %313 = arith.addf %305, %312 : vector<1x2x128xf32>
    %c31_83 = arith.constant 31 : index
    %314 = memref.load %arg3[%c31_83] : memref<32xf32, #tpu.memory_space<smem>>
    %315 = vector.broadcast %314 : f32 to vector<1x2x128xf32>
    %316 = arith.mulf %15, %315 : vector<1x2x128xf32>
    %317 = arith.addf %309, %316 : vector<1x2x128xf32>
    %c3_84 = arith.constant 3 : index
    %318 = memref.load %arg4[%c3_84] : memref<8xf32, #tpu.memory_space<smem>>
    %319 = vector.broadcast %318 : f32 to vector<1x2x128xf32>
    %320 = arith.addf %313, %319 : vector<1x2x128xf32>
    %321 = math.tanh %320 : vector<1x2x128xf32>
    %c7_85 = arith.constant 7 : index
    %322 = memref.load %arg4[%c7_85] : memref<8xf32, #tpu.memory_space<smem>>
    %323 = vector.broadcast %322 : f32 to vector<1x2x128xf32>
    %324 = arith.addf %317, %323 : vector<1x2x128xf32>
    %325 = arith.negf %324 : vector<1x2x128xf32>
    %326 = math.exp %325 : vector<1x2x128xf32>
    %cst_86 = arith.constant 1.000000e+00 : f32
    %327 = vector.broadcast %cst_86 : f32 to vector<1x2x128xf32>
    %328 = arith.addf %327, %326 : vector<1x2x128xf32>
    %329 = arith.divf %327, %328 : vector<1x2x128xf32>
    %330 = arith.subf %321, %15 : vector<1x2x128xf32>
    %331 = arith.mulf %329, %330 : vector<1x2x128xf32>
    %332 = arith.addf %15, %331 : vector<1x2x128xf32>
    %c0_87 = arith.constant 0 : index
    %c3_88 = arith.constant 3 : index
    %c0_89 = arith.constant 0 : index
    %c0_90 = arith.constant 0 : index
    %333 = vector.load %arg7[%c0_87, %c3_88, %c0_89, %c0_90] : memref<1x4x2x128xf32, #tpu.memory_space<vmem>>, vector<1x1x2x128xf32>
    %334 = vector.shape_cast %333 : vector<1x1x2x128xf32> to vector<1x2x128xf32>
    %335 = vector.shape_cast %332 : vector<1x2x128xf32> to vector<1x1x2x128xf32>
    tpu.vector_store %arg7[%c0_87, %c3_88, %c0_89, %c0_90], %335 {strides = array<i32>} : memref<1x4x2x128xf32, #tpu.memory_space<vmem>>, vector<1x1x2x128xf32>,
    return
  }
  func.func @transform_0(%arg0: i32, %arg1: i32, %arg2: memref<32xf32, #tpu.memory_space<smem>>, %arg3: memref<32xf32, #tpu.memory_space<smem>>, %arg4: memref<8xf32, #tpu.memory_space<smem>>) -> (i32, i32, i32, i32) {
    %c0_i32 = arith.constant 0 : i32
    %c0_i32_0 = arith.constant 0 : i32
    %c0_i32_1 = arith.constant 0 : i32
    return %arg0, %c0_i32, %arg1, %c0_i32_0 : i32, i32, i32, i32
  }
  func.func @transform_1(%arg0: i32, %arg1: i32, %arg2: memref<32xf32, #tpu.memory_space<smem>>, %arg3: memref<32xf32, #tpu.memory_space<smem>>, %arg4: memref<8xf32, #tpu.memory_space<smem>>) -> (i32, i32, i32, i32) {
    %c0_i32 = arith.constant 0 : i32
    %c0_i32_0 = arith.constant 0 : i32
    %c0_i32_1 = arith.constant 0 : i32
    return %arg0, %c0_i32, %arg1, %c0_i32_0 : i32, i32, i32, i32
  }
  func.func @transform_2(%arg0: i32, %arg1: i32, %arg2: memref<32xf32, #tpu.memory_space<smem>>, %arg3: memref<32xf32, #tpu.memory_space<smem>>, %arg4: memref<8xf32, #tpu.memory_space<smem>>) -> (i32, i32, i32, i32) {
    %c0_i32 = arith.constant 0 : i32
    %c0_i32_0 = arith.constant 0 : i32
    %c0_i32_1 = arith.constant 0 : i32
    return %arg0, %c0_i32, %arg1, %c0_i32_0 : i32, i32, i32, i32
  }
}

</mosaic_0001>

<bundles_post_ra>
// kernel: my_gru_forward.1
= control target key start
LH: loop header
LB: loop body
LE: loop exit
PB: predicated region body
PF: predicated region fallthrough
CT: control target
= control target key end

     0   :  { %s1240_s0 = inlined_call_operand.vmem [shape: f32[32], index: 0, kind: input, shape index: {}]   ;;  %s1241_s3 = inlined_call_operand.vmem [shape: f32[2,4,2,128], index: 3, kind: input, shape index: {}]   ;;  %s1242_s4 = inlined_call_operand.vmem [shape: f32[2,4,2,128], index: 4, kind: input, shape index: {}]   ;;  %s1243_s5 = inlined_call_operand.vmem [shape: f32[2,4,2,128], index: 5, kind: output, shape index: {}]   ;;  %s1244_s1 = inlined_call_operand.vmem [shape: f32[32], index: 1, kind: input, shape index: {}]   ;;  %s1245_s2 = inlined_call_operand.vmem [shape: f32[8], index: 2, kind: input, shape index: {}]  }
   0x1   :  { %s10_s20 = sshll.u32 %s1240_s0, 4  ;;  %s14_s23 = sshll.u32 %s1244_s1, 4  ;;  %s11_s20 = int_to_ptr.vmem [resolvable:$true] %s10_s20  ;;  %s15_s23 = int_to_ptr.vmem [resolvable:$true] %s14_s23 }
   0x2   :  { %s806_s24 = scalar_lea.vmem %s11_s20, 16  ;;  %p811_p1 = scmp.lt.s32.totalorder %s11_s20, %s11_s20 }
   0x3   :  { %p807_p0 = scmp.ne.s32.totalorder %s11_s20, %s806_s24  ;;  %p812_p2 = scmp.lt.s32.totalorder %s806_s24, %s806_s24 }
   0x5   :  { %p813_p3 = por %p812_p2, %p811_p1 }
   0x7   :  { %p814_p4 = pnand %p813_p3, %p807_p0 }
   0x9   :  { %817 = shalt.err (!%p814_p4)  }
   0xa   :  { %s868_s25 = smov [#allocation3]   ;;  %s818_s26 = scalar_lea.vmem %s15_s23, 16 }
   0xb   :  { %13 = dma.vmem_to_smem %s11_s20, 16, %s868_s25, [#allocation2] }
   0xc   :  { %p819_p5 = scmp.ne.s32.totalorder %s15_s23, %s818_s26  ;;  %p823_p6 = scmp.lt.s32.totalorder %s15_s23, %s15_s23 }
   0xd   :  { %p824_p7 = scmp.lt.s32.totalorder %s818_s26, %s818_s26 }
   0xf   :  { %p825_p8 = por %p824_p7, %p823_p6 }
  0x11   :  { %p826_p9 = pnand %p825_p8, %p819_p5 }
  0x13   :  { %829 = shalt.err (!%p826_p9)  }
  0x14   :  { %s869_s0 = smov [#allocation4]   ;;  %s18_s28 = sshll.u32 %s1245_s2, 4  ;;  %s19_s28 = int_to_ptr.vmem [resolvable:$true] %s18_s28 }
  0x15   :  { %17 = dma.vmem_to_smem %s15_s23, 16, %s869_s0, [#allocation2] }
  0x16   :  { %s830_s29 = scalar_lea.vmem %s19_s28, 16  ;;  %p835_p11 = scmp.lt.s32.totalorder %s19_s28, %s19_s28 }
  0x17   :  { %p831_p10 = scmp.ne.s32.totalorder %s19_s28, %s830_s29  ;;  %p836_p12 = scmp.lt.s32.totalorder %s830_s29, %s830_s29 }
  0x19   :  { %p837_p13 = por %p836_p12, %p835_p11 }
  0x1b   :  { %p838_p0 = pnand %p837_p13, %p831_p10 }
  0x1d   :  { %841 = shalt.err (!%p838_p0)  }
  0x1e   :  { %s870_s30 = smov [#allocation5]  }
  0x1f   :  { %21 = dma.vmem_to_smem %s19_s28, 16, %s870_s30, [#allocation2] }
  0x20   :  { %854 = dma.done.wait [#allocation2], 48 }
  0x21   :  { %855 = vsyncadd [#allocation2], 4294967248 }
  0x22   :  { %23 = sfence }
  0x23   :  { %s910_s6 = smov 0   ;;  %s912_s7 = smov 0  }
  0x24   :  { %s914_s8 = smov 0  }
  0x25 LB: > { %s41_s2 = sadd.s32 1, %s862_s7  ;;  %p661_p1 = scmp.ge.s32.totalorder %s866_s8, 1  ;;  %s866_s8 = sphi %s914_s8, %s29_s8   ;;  %s862_s7 = sphi %s912_s7, %s1247_s7   ;;  %s858_s6 = sphi %s910_s6, %s1246_s6  }
  0x26   : > { %p43_p2 = scmp.ge.s32.totalorder %s41_s2, 2  ;;  %p163_p3 = scmp.lt.s32.totalorder %s866_s8, 3 }
  0x28   : > { %s1249_s2 = smov (%p43_p2, %s41_s2), 0  ;;  %p164_p4 = pnand %p661_p1, %p163_p3 }
  0x29   : > { %p199_p5 = scmp.lt.s32.totalorder (!%p164_p4), %s858_s6, 1  ;;  %s237_s9 = sld [smem:[#allocation3]] (!%p164_p4) }
  0x2a   : > { %167 = sbr.rel (%p164_p4) target bundleno = 141 (0x8d), region = 28  ;;  %s674_s10 = sld [smem:[#allocation3 + $0x10]] (!%p164_p4) }
  0x2b   : > { %s675_s11 = sld [smem:[#allocation3 + $0x1]] (!%p164_p4)  ;;  %s677_s13 = sld [smem:[#allocation3 + $0x2]] (!%p164_p4) }
  0x2c   : > { %s676_s12 = sld [smem:[#allocation3 + $0x11]] (!%p164_p4)  ;;  %s678_s15 = sld [smem:[#allocation3 + $0x12]] (!%p164_p4) }
  0x2d   : > { %s679_s22 = sld [smem:[#allocation3 + $0x3]] (!%p164_p4)  ;;  %s267_s24 = sld [smem:[#allocation4]] (!%p164_p4) }
  0x2e   : > { %s949_s23 = sld [smem:[#allocation3 + $0x13]] (!%p164_p4)  ;;  %s953_s25 = sld [smem:[#allocation4 + $0x10]] (!%p164_p4) }
  0x2f   : > { %v238_v1 = vstv (!%p164_p4), %s237_s9  ;;  %s955_s26 = sld [smem:[#allocation4 + $0x1]] (!%p164_p4)  ;;  %s960_s1 = sld [smem:[#allocation4 + $0x2]] (!%p164_p4) }
  0x30   : > { %v241_v4 = vstv (!%p164_p4), %s674_s10  ;;  %s958_s0 = sld [smem:[#allocation4 + $0x11]] (!%p164_p4)  ;;  %s962_s27 = sld [smem:[#allocation4 + $0x12]] (!%p164_p4) }
  0x31   : > { %s1251_s6 = smov (!%p199_p5, %s858_s6), 1  ;;  %v244_v7 = vstv %s675_s11  ;;  %v252_v10 = vstv %s677_s13  ;;  %s964_s28 = sld [smem:[#allocation4 + $0x3]] }
  0x32   : > { %s928_s14 = sshll.u32 %s1251_s6, 3  ;;  %v248_v9 = vstv %s676_s12  ;;  %v256_v13 = vstv %s678_s15  ;;  %s968_s29 = sld [smem:[#allocation4 + $0x13]] }
  0x33   : > { %s206_s18 = scalar_lea.vmem %s1241_s3, %s928_s14  ;;  %s943_s21 = scalar_lea.vmem %s1242_s4, %s928_s14  ;;  %v260_v21 = vstv %s679_s22  ;;  %v268_v25 = vstv %s267_s24 }
  0x34   : > { %v934_v0 = vld [vmem:[%s206_s18] sm:$0x3]  ;;  %v936_v2 = vld [vmem:[%s206_s18 + $0x2] sm:$0x3]  ;;  %v945_v5 = vld [vmem:[%s206_s18 + $0x4] sm:$0x3]  ;;  %v264_v24 = vstv %s949_s23 }
  0x35   : > { %v239_v3 = vmul.f32 %v238_v1, %v934_v0  ;;  %v242_v6 = vmul.f32 %v241_v4, %v934_v0  ;;  %v245_v8 = vmul.f32 %v936_v2, %v244_v7  ;;  %v249_v11 = vmul.f32 %v936_v2, %v248_v9  ;;  %v966_v17 = vld [vmem:[%s206_s18 + $0x6] sm:$0x3]  ;;  %s970_s30 = sld [smem:[#allocation5]]  ;;  %v973_v19 = vld [vmem:[%s943_s21] sm:$0x3]  ;;  %s975_s6 = sld [smem:[#allocation5 + $0x4]] }
  0x36   : > { %v253_v12 = vmul.f32 %v945_v5, %v252_v10  ;;  %v257_v15 = vmul.f32 %v945_v5, %v256_v13  ;;  %s977_s9 = sld [smem:[#allocation3 + $0x4]]  ;;  %v980_v22 = vld [vmem:[%s943_s21 + $0x2] sm:$0x3]  ;;  %v261_v23 = vmul.f32 %v966_v17, %v260_v21  ;;  %s986_s11 = sld [smem:[#allocation3 + $0x5]]  ;;  %v989_v26 = vld [vmem:[%s943_s21 + $0x4] sm:$0x3]  ;;  %v265_v27 = vmul.f32 %v966_v17, %v264_v24 }
  0x37   : > { %v246_v14 = vadd.f32 %v245_v8, %v239_v3  ;;  %v250_v16 = vadd.f32 %v249_v11, %v242_v6  ;;  %s984_s10 = sld [smem:[#allocation3 + $0x14]]  ;;  %v269_v28 = vmul.f32 %v268_v25, %v973_v19  ;;  %v272_v29 = vstv %s953_s25  ;;  %s995_s12 = sld [smem:[#allocation3 + $0x15]]  ;;  %v1005_v35 = vld [vmem:[%s943_s21 + $0x6] sm:$0x3] }
  0x38   : > { %v276_v30 = vstv %s955_s26  ;;  %s997_s13 = sld [smem:[#allocation3 + $0x6]]  ;;  %v273_v32 = vmul.f32 %v272_v29, %v973_v19  ;;  %v280_v34 = vstv %s958_s0  ;;  %v284_v38 = vstv %s960_s1  ;;  %s1010_s16 = sld [smem:[#allocation3 + $0x7]] }
  0x39   : > { %v254_v18 = vadd.f32 %v253_v12, %v246_v14  ;;  %v258_v20 = vadd.f32 %v257_v15, %v250_v16  ;;  %v277_v33 = vmul.f32 %v980_v22, %v276_v30  ;;  %s1002_s15 = sld [smem:[#allocation3 + $0x16]]  ;;  %v281_v37 = vmul.f32 %v980_v22, %v280_v34  ;;  %s1012_s17 = sld [smem:[#allocation3 + $0x17]] }
  0x3a   : > { %v288_v39 = vstv %s962_s27  ;;  %v285_v41 = vmul.f32 %v989_v26, %v284_v38  ;;  %v292_v43 = vstv %s964_s28  ;;  %v296_v46 = vstv %s968_s29  ;;  %s1020_s18 = sld [smem:[#allocation4 + $0x4]]  ;;  %s1030_s20 = sld [smem:[#allocation4 + $0x5]] }
  0x3b   : > { %v262_v31 = vadd.f32 %v261_v23, %v254_v18  ;;  %v266_v36 = vadd.f32 %v265_v27, %v258_v20  ;;  %v289_v42 = vmul.f32 %v989_v26, %v288_v39  ;;  %v293_v45 = vmul.f32 %v1005_v35, %v292_v43  ;;  %s1022_s19 = sld [smem:[#allocation4 + $0x14]]  ;;  %s1032_s21 = sld [smem:[#allocation4 + $0x15]] }
  0x3c   : > { %v300_v47 = vstv %s970_s30  ;;  %v297_v49 = vmul.f32 %v1005_v35, %v296_v46  ;;  %v304_v50 = vstv %s975_s6  ;;  %v317_v51 = vstv %s977_s9  ;;  %s1037_s22 = sld [smem:[#allocation4 + $0x6]]  ;;  %s1046_s24 = sld [smem:[#allocation4 + $0x7]] }
  0x3d   : > { %v270_v40 = vadd.f32 %v269_v28, %v262_v31  ;;  %v274_v44 = vadd.f32 %v273_v32, %v266_v36  ;;  %v318_v53 = vmul.f32 %v317_v51, %v934_v0  ;;  %v320_v54 = vstv %s984_s10  ;;  %s1042_s23 = sld [smem:[#allocation4 + $0x16]]  ;;  %s1048_s25 = sld [smem:[#allocation4 + $0x17]] }
  0x3e   : > { %v323_v55 = vstv %s986_s11  ;;  %v321_v57 = vmul.f32 %v320_v54, %v934_v0  ;;  %v327_v59 = vstv %s995_s12  ;;  %v331_v62 = vstv %s997_s13  ;;  %s1052_s26 = sld [smem:[#allocation5 + $0x1]]  ;;  %s1054_s0 = sld [smem:[#allocation5 + $0x5]] }
  0x3f   : > { %v278_v48 = vadd.f32 %v277_v33, %v270_v40  ;;  %v282_v52 = vadd.f32 %v281_v37, %v274_v44  ;;  %v324_v58 = vmul.f32 %v936_v2, %v323_v55  ;;  %v328_v61 = vmul.f32 %v936_v2, %v327_v59  ;;  %s1058_s1 = sld [smem:[#allocation3 + $0x8]]  ;;  %s1064_s28 = sld [smem:[#allocation3 + $0x9]] }
  0x40   : > { %v335_v63 = vstv %s1002_s15  ;;  %v332_v4 = vmul.f32 %v945_v5, %v331_v62  ;;  %v339_v9 = vstv %s1010_s16  ;;  %v343_v10 = vstv %s1012_s17  ;;  %s1060_s27 = sld [smem:[#allocation3 + $0x18]]  ;;  %s1068_s29 = sld [smem:[#allocation3 + $0x19]] }
  0x41   : > { %v286_v56 = vadd.f32 %v285_v41, %v278_v48  ;;  %v290_v60 = vadd.f32 %v289_v42, %v282_v52  ;;  %v325_v3 = vadd.f32 %v324_v58, %v318_v53  ;;  %v336_v6 = vmul.f32 %v945_v5, %v335_v63  ;;  %s1070_s30 = sld [smem:[#allocation3 + $0xa]]  ;;  %s1079_s9 = sld [smem:[#allocation3 + $0xb]] }
  0x42   : > { %v329_v8 = vadd.f32 %v328_v61, %v321_v57  ;;  %v340_v12 = vmul.f32 %v966_v17, %v339_v9  ;;  %v344_v13 = vmul.f32 %v966_v17, %v343_v10  ;;  %v347_v16 = vstv %s1020_s18  ;;  %s1074_s6 = sld [smem:[#allocation3 + $0x1a]]  ;;  %s1086_s10 = sld [smem:[#allocation3 + $0x1b]] }
  0x43   : > { %v294_v1 = vadd.f32 %v293_v45, %v286_v56  ;;  %v298_v7 = vadd.f32 %v297_v49, %v290_v60  ;;  %v333_v11 = vadd.f32 %v332_v4, %v325_v3  ;;  %v351_v18 = vstv %s1022_s19  ;;  %s1088_s11 = sld [smem:[#allocation4 + $0x8]]  ;;  %s1098_s13 = sld [smem:[#allocation4 + $0x9]] }
  0x44   : > { %v337_v15 = vadd.f32 %v336_v6, %v329_v8  ;;  %v348_v23 = vmul.f32 %v347_v16, %v973_v19  ;;  %v352_v24 = vmul.f32 %v351_v18, %v973_v19  ;;  %v355_v28 = vstv %s1030_s20  ;;  %s1096_s12 = sld [smem:[#allocation4 + $0x18]]  ;;  %s1106_s15 = sld [smem:[#allocation4 + $0x19]] }
  0x45   : > { %v305_v14 = vadd.f32 %v304_v50, %v298_v7  ;;  %v301_v20 = vadd.f32 %v300_v47, %v294_v1  ;;  %v341_v21 = vadd.f32 %v340_v12, %v333_v11  ;;  %v359_v29 = vstv %s1032_s21  ;;  %s1108_s16 = sld [smem:[#allocation4 + $0xa]]  ;;  %s1117_s18 = sld [smem:[#allocation4 + $0xb]] }
  0x46   : > { %v345_v27 = vadd.f32 %v344_v13, %v337_v15  ;;  %v356_v31 = vmul.f32 %v980_v22, %v355_v28  ;;  %v360_v32 = vmul.f32 %v980_v22, %v359_v29  ;;  %v363_v33 = vstv %s1037_s22  ;;  %s1113_s17 = sld [smem:[#allocation4 + $0x1a]]  ;;  %s1119_s19 = sld [smem:[#allocation4 + $0x1b]] }
  0x47   : > { %v689_v25 = vmul.f32 -1.442695, %v305_v14  ;;  %v349_v30 = vadd.f32 %v348_v23, %v341_v21  ;;  %v364_v36 = vmul.f32 %v989_v26, %v363_v33  ;;  %v367_v37 = vstv %s1042_s23  ;;  %s1124_s20 = sld [smem:[#allocation3 + $0xc]]  ;;  %s1130_s22 = sld [smem:[#allocation5 + $0x6]] }
  0x48   : > { %v353_v34 = vadd.f32 %v352_v24, %v345_v27  ;;  %v368_v39 = vmul.f32 %v989_v26, %v367_v37  ;;  %v371_v40 = vstv %s1046_s24  ;;  %v375_v41 = vstv %s1048_s25  ;;  %s1126_s21 = sld [smem:[#allocation3 + $0x1c]]  ;;  %s1132_s23 = sld [smem:[#allocation3 + $0xd]] }
  0x49   : > { %782 = vpow2.f32 %v689_v25  ;;  %v357_v38 = vadd.f32 %v356_v31, %v349_v30  ;;  %v372_v43 = vmul.f32 %v1005_v35, %v371_v40  ;;  %v376_v44 = vmul.f32 %v1005_v35, %v375_v41  ;;  %s1136_s24 = sld [smem:[#allocation3 + $0x1d]]  ;;  %s1138_s25 = sld [smem:[#allocation3 + $0xe]] }
  0x4a   : > { %v361_v42 = vadd.f32 %v360_v32, %v353_v34  ;;  %v379_v45 = vstv %s1052_s26  ;;  %v383_v47 = vstv %s1054_s0  ;;  %v397_v48 = vstv %s1058_s1  ;;  %s1142_s26 = sld [smem:[#allocation5 + $0x2]]  ;;  %s1146_s0 = sld [smem:[#allocation3 + $0x1e]] }
  0x4b   : > { %v365_v46 = vadd.f32 %v364_v36, %v357_v38  ;;  %v400_v49 = vstv %s1060_s27  ;;  %v398_v51 = vmul.f32 %v397_v48, %v934_v0  ;;  %v403_v53 = vstv %s1064_s28  ;;  %s1148_s1 = sld [smem:[#allocation3 + $0xf]]  ;;  %s1162_s28 = sld [smem:[#allocation4 + $0xc]] }
  0x4c   : > { %v369_v50 = vadd.f32 %v368_v39, %v361_v42  ;;  %v401_v52 = vmul.f32 %v400_v49, %v934_v0  ;;  %v404_v55 = vmul.f32 %v936_v2, %v403_v53  ;;  %v407_v56 = vstv %s1068_s29  ;;  %s1156_s27 = sld [smem:[#allocation3 + $0x1f]]  ;;  %s1164_s29 = sld [smem:[#allocation4 + $0x1c]] }
  0x4d   : > { %v373_v54 = vadd.f32 %v372_v43, %v365_v46  ;;  %v411_v57 = vstv %s1070_s30  ;;  %v408_v59 = vmul.f32 %v936_v2, %v407_v56  ;;  %v415_v61 = vstv %s1074_s6  ;;  %s1173_s30 = sld [smem:[#allocation4 + $0xd]] }
  0x4e   : > { %v377_v58 = vadd.f32 %v376_v44, %v369_v50  ;;  %v412_v60 = vmul.f32 %v945_v5, %v411_v57  ;;  %784 = vtanh.f32 %v301_v20  ;;  %v405_v62 = vadd.f32 %v404_v55, %v398_v51  ;;  %s1175_s6 = sld [smem:[#allocation4 + $0x1d]] }
  0x4f   : > { %v416_v63 = vmul.f32 %v945_v5, %v415_v61  ;;  %v419_v1 = vstv %s1079_s9  ;;  %v409_v4 = vadd.f32 %v408_v59, %v401_v52  ;;  %v380_v7 = vadd.f32 %v379_v45, %v373_v54  ;;  %s1180_s9 = sld [smem:[#allocation4 + $0xe]] }
  0x50   : > { %v384_v3 = vadd.f32 %v383_v47, %v377_v58  ;;  %v420_v6 = vmul.f32 %v966_v17, %v419_v1  ;;  %v413_v8 = vadd.f32 %v412_v60, %v405_v62  ;;  %v423_v9 = vstv %s1086_s10  ;;  %s1185_s10 = sld [smem:[#allocation4 + $0x1e]] }
  0x51   : > { %v427_v10 = vstv %s1088_s11  ;;  %v417_v13 = vadd.f32 %v416_v63, %v409_v4  ;;  %v424_v14 = vmul.f32 %v966_v17, %v423_v9  ;;  %v431_v20 = vstv %s1096_s12  ;;  %s1187_s11 = sld [smem:[#allocation4 + $0x1f]] }
  0x52   : > { %v708_v12 = vmul.f32 -1.442695, %v384_v3  ;;  %v428_v15 = vmul.f32 %v427_v10, %v973_v19  ;;  %v421_v18 = vadd.f32 %v420_v6, %v413_v8  ;;  %v435_v21 = vstv %s1098_s13 }
  0x53   : > { %v783_v11 = vpop.eup %782  ;;  %v425_v23 = vadd.f32 %v424_v14, %v417_v13  ;;  %v432_v24 = vmul.f32 %v431_v20, %v973_v19  ;;  %v436_v25 = vmul.f32 %v980_v22, %v435_v21  ;;  %v439_v28 = vstv %s1106_s15  ;;  %s1197_s15 = scalar_lea.vmem %s1243_s5, %s928_s14  ;;  %s746_s14 = sld [smem:[#allocation5 + $0x3]] }
  0x54   : > { %v309_v16 = vadd.f32 1.0, %v783_v11  ;;  %786 = vpow2.f32 %v708_v12  ;;  %v429_v27 = vadd.f32 %v428_v15, %v421_v18  ;;  %v443_v29 = vstv %s1108_s16  ;;  %s1201_s16 = sld [smem:[#allocation4 + $0xf]] }
  0x55   : > { %v433_v30 = vadd.f32 %v432_v24, %v425_v23  ;;  %v440_v31 = vmul.f32 %v980_v22, %v439_v28  ;;  %v444_v32 = vmul.f32 %v989_v26, %v443_v29  ;;  %v447_v33 = vstv %s1113_s17  ;;  %s1205_s17 = sld [smem:[#allocation5 + $0x7]] }
  0x56   : > { %788 = vrcp.f32 %v309_v16  ;;  %v437_v34 = vadd.f32 %v436_v25, %v429_v27  ;;  %v448_v36 = vmul.f32 %v989_v26, %v447_v33  ;;  %v451_v37 = vstv %s1117_s18 }
  0x57   : > { %v455_v38 = vstv %s1119_s19  ;;  %790 = vtanh.f32 %v380_v7  ;;  %v441_v39 = vadd.f32 %v440_v31, %v433_v30  ;;  %v452_v43 = vmul.f32 %v1005_v35, %v451_v37 }
  0x58   : > { %v456_v40 = vmul.f32 %v1005_v35, %v455_v38  ;;  %v785_v41 = vpop.eup %784  ;;  %v445_v42 = vadd.f32 %v444_v32, %v437_v34  ;;  %v477_v44 = vstv %s1124_s20  ;;  %v480_v45 = vstv %s1126_s21 }
  0x59   : > { %v449_v46 = vadd.f32 %v448_v36, %v441_v39  ;;  %v478_v47 = vmul.f32 %v477_v44, %v934_v0  ;;  %v481_v48 = vmul.f32 %v480_v45, %v934_v0  ;;  %v483_v49 = vstv %s1132_s23 }
  0x5a   : > { %v463_v50 = vstv %s1130_s22  ;;  %v484_v51 = vmul.f32 %v936_v2, %v483_v49  ;;  %v487_v52 = vstv %s1136_s24  ;;  %v491_v53 = vstv %s1138_s25 }
  0x5b   : > { %v312_v54 = vsub.f32 %v785_v41, %v973_v19  ;;  %v457_v55 = vadd.f32 %v456_v40, %v449_v46  ;;  %v488_v56 = vmul.f32 %v936_v2, %v487_v52  ;;  %v492_v57 = vmul.f32 %v945_v5, %v491_v53 }
  0x5c   : > { %v459_v0 = vstv %s1142_s26  ;;  %v485_v58 = vadd.f32 %v484_v51, %v478_v47  ;;  %v495_v59 = vstv %s1146_s0  ;;  %v499_v60 = vstv %s1148_s1 }
  0x5d   : > { %v464_v62 = vadd.f32 %v463_v50, %v457_v55  ;;  %v489_v63 = vadd.f32 %v488_v56, %v481_v48  ;;  %v496_v2 = vmul.f32 %v945_v5, %v495_v59  ;;  %v500_v1 = vmul.f32 %v966_v17, %v499_v60 }
  0x5e   : > { %v787_v61 = vpop.eup %786  ;;  %v453_v6 = vadd.f32 %v452_v43, %v445_v42  ;;  %v493_v7 = vadd.f32 %v492_v57, %v485_v58  ;;  %v503_v8 = vstv %s1156_s27  ;;  %v507_v13 = vstv %s1162_s28 }
  0x5f   : > { %v388_v4 = vadd.f32 1.0, %v787_v61  ;;  %v728_v10 = vmul.f32 -1.442695, %v464_v62  ;;  %v497_v11 = vadd.f32 %v496_v2, %v489_v63  ;;  %v504_v12 = vmul.f32 %v966_v17, %v503_v8 }
  0x60   : > { %v789_v3 = vpop.eup %788  ;;  %v501_v5 = vadd.f32 %v500_v1, %v493_v7  ;;  %v511_v14 = vstv %s1164_s29  ;;  %v508_v18 = vmul.f32 %v507_v13, %v973_v19  ;;  %v515_v21 = vstv %s1173_s30 }
  0x61   : > { %v313_v9 = vmul.f32 %v789_v3, %v312_v54  ;;  %792 = vrcp.f32 %v388_v4  ;;  %v791_v15 = vpop.eup %790  ;;  %v505_v17 = vadd.f32 %v504_v12, %v497_v11  ;;  %v512_v20 = vmul.f32 %v511_v14, %v973_v19 }
  0x62   : > { %794 = vpow2.f32 %v728_v10  ;;  %v519_v23 = vstv %s1175_s6  ;;  %v460_v24 = vadd.f32 %v459_v0, %v453_v6  ;;  %v509_v25 = vadd.f32 %v508_v18, %v501_v5 }
  0x63   : > { %v314_v16 = vadd.f32 %v313_v9, %v973_v19  ;;  %v516_v27 = vmul.f32 %v980_v22, %v515_v21  ;;  %v520_v28 = vmul.f32 %v980_v22, %v519_v23  ;;  %v513_v29 = vadd.f32 %v512_v20, %v505_v17 }
  0x64   : > { %v523_v30 = vstv %s1180_s9  ;;  %v527_v31 = vstv %s1185_s10  ;;  %v535_v32 = vstv %s1187_s11  ;;  %v391_v36 = vsub.f32 %v791_v15, %v980_v22 }
  0x65   : > { %315 = vst [vmem:[%s1197_s15] sm:$0x3] %v314_v16  ;;  %v528_v33 = vmul.f32 %v989_v26, %v527_v31  ;;  %v521_v34 = vadd.f32 %v520_v28, %v513_v29  ;;  %v536_v19 = vmul.f32 %v1005_v35, %v535_v32  ;;  %v517_v37 = vadd.f32 %v516_v27, %v509_v25 }
  0x66   : > { %v524_v38 = vmul.f32 %v989_v26, %v523_v30  ;;  %796 = vtanh.f32 %v460_v24  ;;  %v531_v40 = vstv %s1201_s16  ;;  %v543_v41 = vstv %s1205_s17 }
  0x67   : > { %v529_v39 = vadd.f32 %v528_v33, %v521_v34  ;;  %v532_v47 = vmul.f32 %v1005_v35, %v531_v40  ;;  %v539_v53 = vstv %s746_s14 }
  0x68   : > { %v525_v46 = vadd.f32 %v524_v38, %v517_v37 }
  0x69   : > { %v537_v43 = vadd.f32 %v536_v19, %v529_v39 }
  0x6a   : > { %v533_v52 = vadd.f32 %v532_v47, %v525_v46 }
  0x6b   : > { %v793_v42 = vpop.eup %792  ;;  %v544_v49 = vadd.f32 %v543_v41, %v537_v43 }
  0x6c   : > { %v795_v44 = vpop.eup %794  ;;  %v392_v45 = vmul.f32 %v793_v42, %v391_v36  ;;  %v540_v55 = vadd.f32 %v539_v53, %v533_v52 }
  0x6d   : > { %v468_v48 = vadd.f32 1.0, %v795_v44  ;;  %v748_v51 = vmul.f32 -1.442695, %v544_v49 }
  0x6e   : > { %v393_v50 = vadd.f32 %v980_v22, %v392_v45 }
  0x6f   : > { %798 = vrcp.f32 %v468_v48 }
  0x70   : > { %709 = vst [vmem:[%s1197_s15 + $0x2] sm:$0x3] %v393_v50  ;;  %800 = vpow2.f32 %v748_v51  ;;  %v797_v54 = vpop.eup %796 }
  0x71   : > { %v471_v56 = vsub.f32 %v797_v54, %v989_v26  ;;  %802 = vtanh.f32 %v540_v55 }
  0x79   : > { %v799_v57 = vpop.eup %798 }
  0x7a   : > { %v472_v0 = vmul.f32 %v799_v57, %v471_v56  ;;  %v801_v58 = vpop.eup %800 }
  0x7b   : > { %v548_v60 = vadd.f32 1.0, %v801_v58  ;;  %v803_v22 = vpop.eup %802 }
  0x7c   : > { %v473_v59 = vadd.f32 %v989_v26, %v472_v0  ;;  %v551_v61 = vsub.f32 %v803_v22, %v1005_v35 }
  0x7d   : > { %804 = vrcp.f32 %v548_v60 }
  0x7e   : > { %729 = vst [vmem:[%s1197_s15 + $0x4] sm:$0x3] %v473_v59 }
  0x87   : > { %v805_v62 = vpop.eup %804 }
  0x88   : > { %v552_v63 = vmul.f32 %v805_v62, %v551_v61 }
  0x8a   : > { %v553_v2 = vadd.f32 %v1005_v35, %v552_v63 }
  0x8c   : > { %749 = vst [vmem:[%s1197_s15 + $0x6] sm:$0x3] %v553_v2 }
  0x8d PF: > { %s29_s8 = sadd.s32 1, %s866_s8   ;;  %s1246_s6 = smov %s862_s7 }
  0x8e   : > { %p26_p6 = scmp.ge.s32.totalorder %s29_s8, 4   ;;  %s1247_s7 = smov %s1249_s2 }
  0x90   :  { %28 = sbr.rel (!%p26_p6) target bundleno = 37 (0x25), region = 70 }

</bundles_post_ra>
